<compile_context>
chip_gen: v7x
topology: tpu7x:2x2x1
jax: 0.10.0
libtpu: 0.0.40
codegen_flags: <defaults>
</compile_context>

<pallas_src>
import jax
import jax.numpy as jnp
from jax.experimental import pallas as pl
from jax.experimental.pallas import tpu as pltpu


def fused_conv_cat_sigmoid_kernel(x_ref, w_ref, b_ref, o_ref):
    """Single invocation: both 1x1 convs (block-diag) + cat(dim=0) + sigmoid.

    x_ref: (2*C_in,  PL)  — [x1_padded_flat ; x2_padded_flat], lane-padded to 128
    w_ref: (2*C_out, 2*C_in) — blockdiag(w1, w2)
    b_ref: (2*C_out, 1)   — [b1 ; b2]
    o_ref: (2*C_out, PL)  — columns >= (H+2)*(W+2) are don't-care
    """
    y = jnp.dot(w_ref[...], x_ref[...], preferred_element_type=jnp.float32)
    o_ref[...] = jax.nn.sigmoid(y + b_ref[...])


def model_forward(x1, x2, w1, b1, w2, b2):
    assert x1.shape[0] == 1 and x2.shape[0] == 1, "batch size 1 (as in the spec)"
    assert x2.shape == x1.shape, "torch.cat requires matching conv output shapes"
    _, C_in, H, W = x1.shape
    C_out = w1.shape[0]
    Hp, Wp = H + 2, W + 2
    P = Hp * Wp
    PL = max(128, ((P + 127) // 128) * 128)   # lane-dense width

    # --- wrapper-side prep (tiny, fuses into surrounding HLO) -------------
    # Spatial zero-pad (padding=1) then flatten: border pixels are zero so the
    # 1x1 conv there reduces to bias-only, exactly matching Conv2d(padding=1).
    def pad_flat(x):
        xp = jnp.pad(x, ((0, 0), (0, 0), (1, 1), (1, 1)))       # (1,C,Hp,Wp)
        return xp.reshape(C_in, P)

    X = jnp.concatenate([pad_flat(x1), pad_flat(x2)], axis=0)    # (2*C_in, P)
    X = jnp.pad(X, ((0, 0), (0, PL - P)))                        # (2*C_in, PL)

    # Block-diagonal weight stack: one matmul computes both convs.
    z = jnp.zeros((C_out, C_in), w1.dtype)
    W_bd = jnp.concatenate(
        [jnp.concatenate([w1, z], axis=1),
         jnp.concatenate([z, w2], axis=1)], axis=0)              # (2*C_out, 2*C_in)
    b_stack = jnp.concatenate([b1, b2], axis=0).reshape(2 * C_out, 1)

    vmem = pl.BlockSpec(memory_space=pltpu.MemorySpace.VMEM)
    out = pl.pallas_call(
        fused_conv_cat_sigmoid_kernel,
        out_shape=jax.ShapeDtypeStruct((2 * C_out, PL), jnp.float32),
        in_specs=[vmem, vmem, vmem],
        out_specs=vmem,
    )(X, W_bd, b_stack)

    # (2, C_out, Hp, Wp) == sigmoid(cat([conv(x1), conv(x2)], dim=0))
    return out[:, :P].reshape(2, C_out, Hp, Wp)


def reference_forward(x1, x2, w1, b1, w2, b2):
    def conv(x, w, b):
        xp = jnp.pad(x, ((0, 0), (0, 0), (1, 1), (1, 1)))
        return jnp.einsum("oc,nchw->nohw", w, xp) + b[None, :, None, None]
    z = jnp.concatenate([conv(x1, w1, b1), conv(x2, w2, b2)], axis=0)
    return jax.nn.sigmoid(z)


if __name__ == "__main__":
    key = jax.random.PRNGKey(0)
    k1, k2, k3, k4, k5, k6 = jax.random.split(key, 6)

    C_in, C_out, H, W = 10, 10, 5, 5
    # Conv2d default init: uniform(-1/sqrt(fan_in), 1/sqrt(fan_in)), fan_in = C_in*1*1
    bound = 1.0 / (C_in ** 0.5)
    w1 = jax.random.uniform(k1, (C_out, C_in), jnp.float32, -bound, bound)
    b1 = jax.random.uniform(k2, (C_out,), jnp.float32, -bound, bound)
    w2 = jax.random.uniform(k3, (C_out, C_in), jnp.float32, -bound, bound)
    b2 = jax.random.uniform(k4, (C_out,), jnp.float32, -bound, bound)

    x1 = jax.random.normal(k5, (1, C_in, H, W), jnp.float32)
    # matching spatial shape so the cat (and the module) is well-defined
    x2 = jax.random.normal(k6, (1, C_in, H, W), jnp.float32)

    out = jax.block_until_ready(model_forward(x1, x2, w1, b1, w2, b2))

    ref = reference_forward(x1, x2, w1, b1, w2, b2)
    assert out.shape == (2, C_out, H + 2, W + 2), out.shape
    assert jnp.allclose(out, ref, atol=1e-5, rtol=1e-5), "mismatch vs reference"

    print("KERNEL_OK")
</pallas_src>

<mosaic_0001>
module attributes {stable_mosaic.version = 11 : i64} {
  func.func @fused_conv_cat_sigmoid_kernel(%arg0: memref<20x128xf32, #tpu.memory_space<vmem>>, %arg1: memref<20x20xf32, #tpu.memory_space<vmem>>, %arg2: memref<20x1xf32, #tpu.memory_space<vmem>>, %arg3: memref<20x128xf32, #tpu.memory_space<vmem>>) attributes {dimension_semantics = [], scalar_prefetch = 0 : i64, scratch_operands = 0 : i64, tpu.core_type = #tpu.core_type<tc>} {
    %c0 = arith.constant 0 : index
    %c0_0 = arith.constant 0 : index
    %0 = vector.load %arg1[%c0, %c0_0] : memref<20x20xf32, #tpu.memory_space<vmem>>, vector<20x20xf32>
    %c0_1 = arith.constant 0 : index
    %c0_2 = arith.constant 0 : index
    %1 = vector.load %arg0[%c0_1, %c0_2] : memref<20x128xf32, #tpu.memory_space<vmem>>, vector<20x128xf32>
    %cst = arith.constant dense<0.000000e+00> : vector<20x128xf32>
    %2 = tpu.matmul %0, %1, %cst {dimension_numbers = #tpu.dot_dimension_numbers<[1], [0], [0], [1], [0, 0, 1, 1], [], []>} : vector<20x20xf32>, vector<20x128xf32>, vector<20x128xf32> -> vector<20x128xf32>
    %c0_3 = arith.constant 0 : index
    %c0_4 = arith.constant 0 : index
    %3 = vector.load %arg2[%c0_3, %c0_4] : memref<20x1xf32, #tpu.memory_space<vmem>>, vector<20x1xf32>
    %4 = vector.broadcast %3 : vector<20x1xf32> to vector<20x128xf32>
    %5 = arith.addf %2, %4 : vector<20x128xf32>
    %6 = arith.negf %5 : vector<20x128xf32>
    %7 = math.exp %6 : vector<20x128xf32>
    %cst_5 = arith.constant 1.000000e+00 : f32
    %8 = vector.broadcast %cst_5 : f32 to vector<20x128xf32>
    %9 = arith.addf %8, %7 : vector<20x128xf32>
    %10 = arith.divf %8, %9 : vector<20x128xf32>
    %c0_6 = arith.constant 0 : index
    %c0_7 = arith.constant 0 : index
    %11 = vector.load %arg3[%c0_6, %c0_7] : memref<20x128xf32, #tpu.memory_space<vmem>>, vector<20x128xf32>
    tpu.vector_store %arg3[%c0_6, %c0_7], %10 {strides = array<i32>} : memref<20x128xf32, #tpu.memory_space<vmem>>, vector<20x128xf32>,
    return
  }
}

</mosaic_0001>

<bundles_post_ra>
// kernel: tpu_custom_call.1
= control target key start
LH: loop header
LB: loop body
LE: loop exit
PB: predicated region body
PF: predicated region fallthrough
CT: control target
= control target key end

     0   :  { %8 = vsyncpa [#allocation3], 0  ;;  %s369_s0 = inlined_call_operand.vmem [shape: f32[20,128], index: 0, kind: input, shape index: {}]   ;;  %s370_s1 = inlined_call_operand.hbm [shape: f32[20,20], index: 1, kind: input, shape index: {}]   ;;  %s371_s2 = inlined_call_operand.vmem [shape: f32[20,1], index: 2, kind: input, shape index: {}]   ;;  %s372_s3 = inlined_call_operand.hbm [shape: f32[20,128], index: 3, kind: output, shape index: {}]  }
   0x1   :  { %9 = vsyncpa [#allocation4], 0  ;;  %s290_s12 = smov [#allocation2]   ;;  %s242_s16 = scalar_lea.hbm %s370_s1, 384 }
   0x2   :  { %s17_s13 = sshll.u32 %s290_s12, 4  ;;  %p243_p0 = scmp.ne.s32.totalorder %s370_s1, %s242_s16  ;;  %s18_s13 = int_to_ptr.vmem [resolvable:$true] %s17_s13 }
   0x3   :  { %p246_p1 = scmp.lt.u32.totalorder %s242_s16, %s370_s1 }
   0x5   :  { %p248_p2 = pnand %p246_p1, %p243_p0 }
   0x7   :  { %251 = shalt.err (!%p248_p2)
}
   0x8   :  { %s252_s21 = scalar_lea.vmem %s18_s13, 384  ;;  %p257_p4 = scmp.lt.s32.totalorder %s18_s13, %s18_s13 }
   0x9   :  { %p253_p3 = scmp.ne.s32.totalorder %s18_s13, %s252_s21  ;;  %p258_p5 = scmp.lt.s32.totalorder %s252_s21, %s252_s21 }
   0xb   :  { %p259_p6 = por %p258_p5, %p257_p4 }
   0xd   :  { %p260_p7 = pnand %p259_p6, %p253_p3 }
   0xf   :  { %263 = shalt.err (!%p260_p7)
}
  0x10   :  { %s291_s22 = smov 128   ;;  %s292_s23 = smov 8  }
  0x11   :  { %23 = dma.hbm_to_vmem [thread:$0]  %s370_s1, 384, %s18_s13, [#allocation3], %s291_s22, %s291_s22, %s292_s23  }
  0x12   :  { %286 = dma.done.wait [#allocation3], 384  }
  0x13   :  { %287 = vsyncadd [#allocation3], 4294966912  ;;  %v293_v0 = vmov 0.0|0.0   ;;  %vm294_vm0 = vmmov 0   ;;  %v295_v1 = vmov 0.0   ;;  %v296_v2 = vmov 0  }
  0x14   :  { %213 = vmatprep.subr.bf16.mxu0 %v293_v0  ;;  %216 = vmatprep.subr.bf16.mxu1 %v293_v0  ;;  %v32_v3 = vld [vmem:[%s369_s0] sm:$0xff]  ;;  %v33_v4 = vld [vmem:[%s369_s0 + $0x8] sm:$0xff]  ;;  %v37_v7 = vld [vmem:[%s371_s2 + $0x10] sm:$0xf]  ;;  %vm63_vm1 = vcmask 1043456   ;;  %vm53_vm2 = vcmask 162816  }
  0x15   :  { %204 = vmatprep.mubr.msk.f32.mxu0 %vm294_vm0, %v295_v1  ;;  %207 = vmatprep.mubr.msk.f32.mxu1 %vm294_vm0, %v295_v1  ;;  %v214_v5 = vpack.c.bf16 %v33_v4, %v32_v3  ;;  %v35_v6 = vld [vmem:[%s371_s2] sm:$0xff]  ;;  %v34_v8 = vld [vmem:[%s369_s0 + $0x10] sm:$0xf]  ;;  %v30_v10 = vld [vmem:[#allocation2 + $0x8] sm:$0xff]  ;;  %s297_s0 = smov [#allocation5]  }
  0x16   :  { %228 = vset.pattern.permute.xlu0 %v296_v2  ;;  %229 = vset.pattern.permute.xlu1 %v296_v2  ;;  %v29_v9 = vld [vmem:[#allocation2] sm:$0xff]  ;;  %v36_v11 = vld [vmem:[%s371_s2 + $0x8] sm:$0xff]  ;;  %v31_v12 = vld [vmem:[#allocation2 + $0x10] sm:$0xf]  ;;  %s173_s2 = sshll.u32 %s297_s0, 4  ;;  %s174_s2 = int_to_ptr.vmem [resolvable:$true] %s173_s2 }
  0x17   :  { %215 = vmatpush3.bf16.msra.mxu0 %v214_v5  ;;  %218 = vmatpush3.bf16.msra.mxu1 %v214_v5  ;;  %s264_s10 = scalar_lea.vmem %s174_s2, 384  ;;  %p269_p9 = scmp.lt.s32.totalorder %s174_s2, %s174_s2 }
  0x18   :  { %202 = vmatprep.subr.mxu0 %v295_v1  ;;  %217 = vmatprep.subr.mxu1 %v295_v1  ;;  %p265_p8 = scmp.ne.s32.totalorder %s174_s2, %s264_s10  ;;  %p270_p10 = scmp.lt.s32.totalorder %s264_s10, %s264_s10 }
  0x19   :  { %40 = vperm.xlu0 %228, %v35_v6   ;;  %50 = vperm.xlu1 %229, %v37_v7  }
  0x1a   :  { %p271_p11 = por %p270_p10, %p269_p9 }
  0x1b   :  { %203 = vmatpush3.msk.msra.mxu0 %vm63_vm1, %v34_v8  ;;  %219 = vmatpush3.msk.msra.mxu1 %vm63_vm1, %v34_v8 }
  0x1c   :  { %205 = vmatmul.mubr.msk.f32.vlgmr.msra.gmra.mrb[0].mxu0 %vm53_vm2, %v29_v9  ;;  %208 = vmatmul.mubr.msk.f32.vlgmr.msra.gmra.mrb[0].mxu1 %vm53_vm2, %v30_v10  ;;  %p272_p12 = pnand %p271_p11, %p265_p8 }
  0x1d   :  { %210 = vmatprep.mubr.msk.f32.mxu1 %vm294_vm0, %v295_v1  ;;  %45 = vperm.xlu0 %228, %v36_v11  }
  0x20   :  { %211 = vmatmul.mubr.msk.f32.gmra.mrb[2].mxu1 %vm53_vm2, %v31_v12 }
  0x98   :  { %v41_v13 = vpop.permute.xlu0 %40  ;;  %v51_v21 = vpop.permute.xlu1 %50 }
  0x9c   :  { %v46_v14 = vpop.permute.xlu0 %45 }
  0xef   :  { %v133_v15 = vpop.f32.mrb[0].mxu0  ;;  %v138_v16 = vpop.f32.mrb[0].mxu1 }
  0xf0   :  { %v134_v17 = vadd.f32 %v133_v15, %v41_v13  ;;  %v139_v18 = vadd.f32 %v138_v16, %v46_v14  ;;  %v209_v19 = vpop.f32.mrb[1].mxu1  ;;  %v206_v20 = vpop.f32.mrb[1].mxu0 }
  0xf2   :  { %v189_v22 = vmul.f32 -1.442695, %v134_v17  ;;  %v190_v23 = vmul.f32 -1.442695, %v139_v18 }
  0xf3   :  { %v143_v24 = vpop.f32.mrb[2].mxu1 }
  0xf4   :  { %230 = vpow2.f32 %v189_v22  ;;  %v144_v25 = vadd.f32 %v143_v24, %v51_v21  ;;  %v212_v26 = vpop.f32.mrb[3].mxu1 }
  0xf5   :  { %232 = vpow2.f32 %v190_v23 }
  0xf6   :  { %v191_v27 = vmul.f32 -1.442695, %v144_v25 }
  0xf8   :  { %234 = vpow2.f32 %v191_v27 }
  0xfe   :  { %v231_v28 = vpop.eup %230 }
  0xff   :  { %v233_v29 = vpop.eup %232  ;;  %v156_v30 = vadd.f32 1.0, %v231_v28 }
 0x100   :  { %v157_v31 = vadd.f32 1.0, %v233_v29 }
 0x101   :  { %236 = vrcp.f32 %v156_v30 }
 0x102   :  { %v235_v32 = vpop.eup %234  ;;  %238 = vrcp.f32 %v157_v31 }
 0x103   :  { %v158_v33 = vadd.f32 1.0, %v235_v32 }
 0x105   :  { %240 = vrcp.f32 %v158_v33 }
 0x10b   :  { %v237_v34 = vpop.eup %236 }
 0x10c   :  { %v239_v35 = vpop.eup %238  ;;  %165 = vst [vmem:[#allocation5] sm:$0xff] %v237_v34 }
 0x10d   :  { %166 = vst [vmem:[#allocation5 + $0x8] sm:$0xff] %v239_v35 }
 0x10f   :  { %v241_v36 = vpop.eup %240 }
 0x110   :  { %167 = vst [vmem:[#allocation5 + $0x10] sm:$0xf] %v241_v36 }
 0x111   :  { %275 = shalt.err (!%p272_p12)
}
 0x112   :  { %s276_s13 = scalar_lea.hbm %s372_s3, 384 }
 0x113   :  { %p277_p13 = scmp.ne.s32.totalorder %s372_s3, %s276_s13  ;;  %p280_p0 = scmp.lt.u32.totalorder %s276_s13, %s372_s3 }
 0x115   :  { %p282_p1 = pnand %p280_p0, %p277_p13 }
 0x117   :  { %285 = shalt.err (!%p282_p1)
}
 0x118   :  { %179 = dma.vmem_to_hbm [thread:$0]  %s174_s2, 384, %s372_s3, [#allocation4], %s291_s22, %s291_s22, %s292_s23  }
 0x119   :  { %288 = dma.done.wait [#allocation4], 384  }
 0x11a   :  { %289 = vsyncadd [#allocation4], 4294966912 }
 0x11b   :  { %183 = vsyncpa [#allocation3], 1 }
 0x11c   :  { %184 = vsyncpa [#allocation4], 1 }

</bundles_post_ra>
